<compile_context>
chip_gen: v5e
topology: v5e:2x2
jax: 0.10.0
libtpu: 0.0.40
codegen_flags: <defaults>
</compile_context>

<pallas_src>
import jax
import jax.numpy as jnp
from jax import lax
from jax.experimental import pallas as pl
from jax.experimental.pallas import tpu as pltpu


def _round_up(x, m):
    return (x + m - 1) // m * m


def _conv_stats_kernel(p_ref, w_ref, y_ref, sum_ref, sq_ref):
    """One (batch, M-tile) step: lane-dense MXU matmul + per-channel partial stats.

    p_ref:   (1, TM, K)       bf16  im2col patches for this tile
    w_ref:   (K, COUT_P)      bf16  folded weights (Cout zero-padded to 128)
    y_ref:   (1, TM, COUT_P)  f32   conv output tile (lane dense)
    sum_ref: (1, 1, COUT_P)   f32   per-batch channel sum   (resident over the M axis)
    sq_ref:  (1, 1, COUT_P)   f32   per-batch channel sumsq (resident over the M axis)
    """
    @pl.when(pl.program_id(1) == 0)
    def _():
        sum_ref[...] = jnp.zeros_like(sum_ref)
        sq_ref[...] = jnp.zeros_like(sq_ref)

    # Single K-folded matmul (bf16 in, f32 accumulate) instead of 27 per-tap dots.
    acc = jnp.dot(p_ref[0], w_ref[...], preferred_element_type=jnp.float32)  # (TM, COUT_P)
    y_ref[0] = acc
    sum_ref[...] += jnp.sum(acc, axis=0)[None, None, :]
    sq_ref[...] += jnp.sum(acc * acc, axis=0)[None, None, :]


def conv3d_bn_relu(x_ncdhw, weight_oidhw, gamma, beta, *, stride=1, eps=1e-5, tile_m=256):
    """Forward of the PyTorch `Conv3d` block (conv(no bias) -> BN(train) -> ReLU), NCDHW in/out."""
    N, Cin, D, H, W = x_ncdhw.shape
    Cout, _, KD, KH, KW = weight_oidhw.shape
    D_out = (D - KD) // stride + 1
    H_out = (H - KH) // stride + 1
    W_out = (W - KW) // stride + 1
    M = D_out * H_out * W_out
    K = KD * KH * KW * Cin
    COUT_P = _round_up(Cout, 128)                       # lane-dense output channels

    TM = min(tile_m, _round_up(M, 8))                   # M tile, multiple of 8
    M_pad = _round_up(M, TM)

    # ---- im2col in the wrapper (tap-major, Cin-minor contraction order) -> (N, M, K) bf16.
    x = jnp.transpose(x_ncdhw, (0, 2, 3, 4, 1)).astype(jnp.bfloat16)   # N,D,H,W,Cin
    cols = []
    for kd in range(KD):
        for kh in range(KH):
            for kw in range(KW):
                cols.append(
                    x[:, kd: kd + stride * (D_out - 1) + 1: stride,
                         kh: kh + stride * (H_out - 1) + 1: stride,
                         kw: kw + stride * (W_out - 1) + 1: stride, :])
    patches = jnp.concatenate(cols, axis=-1).reshape(N, M, K)
    if M_pad != M:
        # Zero rows contribute 0 to y / sum / sumsq; true element count is used for BN below.
        patches = jnp.pad(patches, ((0, 0), (0, M_pad - M), (0, 0)))

    # Weights folded to (K, COUT_P) with matching (kd, kh, kw, cin) order; Cout padded to 128.
    w = jnp.transpose(weight_oidhw, (2, 3, 4, 1, 0)).reshape(K, Cout).astype(jnp.bfloat16)
    w = jnp.pad(w, ((0, 0), (0, COUT_P - Cout)))

    num_m_tiles = M_pad // TM
    y_pad, sums, sqs = pl.pallas_call(
        _conv_stats_kernel,
        out_shape=(
            jax.ShapeDtypeStruct((N, M_pad, COUT_P), jnp.float32),
            jax.ShapeDtypeStruct((N, 1, COUT_P), jnp.float32),
            jax.ShapeDtypeStruct((N, 1, COUT_P), jnp.float32),
        ),
        grid_spec=pltpu.PrefetchScalarGridSpec(
            num_scalar_prefetch=0,
            grid=(N, num_m_tiles),
            in_specs=[
                pl.BlockSpec((1, TM, K), lambda n, m: (n, m, 0)),
                pl.BlockSpec((K, COUT_P), lambda n, m: (0, 0)),
            ],
            out_specs=(
                pl.BlockSpec((1, TM, COUT_P), lambda n, m: (n, m, 0)),
                pl.BlockSpec((1, 1, COUT_P), lambda n, m: (n, 0, 0)),   # per-batch partial stats
                pl.BlockSpec((1, 1, COUT_P), lambda n, m: (n, 0, 0)),
            )),
        compiler_params=pltpu.CompilerParams(
            dimension_semantics=("parallel", "arbitrary"),   # batch parallel (v7x megacore), M sequential
            vmem_limit_bytes=32 * 1024 * 1024),
    )(patches, w)

    # ---- Fold BatchNorm3d (training-mode batch statistics, biased variance) into scale/shift (f32).
    count = N * M
    s = jnp.sum(sums[:, 0, :Cout], axis=0)
    sq = jnp.sum(sqs[:, 0, :Cout], axis=0)
    mean = s / count
    var = jnp.maximum(sq / count - mean * mean, 0.0)     # clamp against E[y^2]-E[y]^2 cancellation
    scale = gamma.astype(jnp.float32) * lax.rsqrt(var + eps)
    shift = beta.astype(jnp.float32) - mean * scale
    # TODO(synk): nn.BatchNorm3d running_mean/running_var momentum updates are a training-time
    # side effect and do not affect the returned tensor; omitted here.

    # ---- BN + ReLU + un-pad + layout back to NCDHW: trivially fused elementwise in XLA
    # (per review: cheaper than a second Pallas pass over y with Cout<128 masked stores).
    y = y_pad[:, :M, :Cout]
    out = jnp.maximum(y * scale + shift, 0.0)
    out = out.reshape(N, D_out, H_out, W_out, Cout)
    return jnp.transpose(out, (0, 4, 1, 2, 3))


def _reference(x, weight, gamma, beta, *, stride=1, eps=1e-5):
    # Same mixed-precision policy as the kernel: bf16 conv inputs, f32 accumulation,
    # f32 BatchNorm (training-mode batch stats, biased variance) + ReLU.
    y = lax.conv_general_dilated(
        x.astype(jnp.bfloat16), weight.astype(jnp.bfloat16),
        window_strides=(stride,) * 3, padding="VALID",
        dimension_numbers=("NCDHW", "OIDHW", "NCDHW"),
        preferred_element_type=jnp.float32)
    mean = y.mean(axis=(0, 2, 3, 4), keepdims=True)
    var = y.var(axis=(0, 2, 3, 4), keepdims=True)        # biased, like PyTorch BN
    yn = (y - mean) / jnp.sqrt(var + eps)
    yn = yn * gamma[None, :, None, None, None] + beta[None, :, None, None, None]
    return jnp.maximum(yn, 0.0)


if __name__ == "__main__":
    key = jax.random.PRNGKey(0)
    k1, k2, k3, k4 = jax.random.split(key, 4)

    # Small shapes consistent with the module: batch=2, C_in=4, C_out=8, D=8, H=W=16, k=3.
    N, Cin, Cout, D, H, W = 2, 4, 8, 8, 16, 16
    x = jax.random.normal(k1, (N, Cin, D, H, W), jnp.float32)
    weight = 0.1 * jax.random.normal(k2, (Cout, Cin, 3, 3, 3), jnp.float32)
    gamma = 1.0 + 0.1 * jax.random.normal(k3, (Cout,), jnp.float32)
    beta = 0.1 * jax.random.normal(k4, (Cout,), jnp.float32)

    for stride in (1, 2):   # the module allows stride in [1, 2]
        out = jax.block_until_ready(conv3d_bn_relu(x, weight, gamma, beta, stride=stride))
        ref = _reference(x, weight, gamma, beta, stride=stride)
        d_o = (D - 3) // stride + 1
        h_o = (H - 3) // stride + 1
        w_o = (W - 3) // stride + 1
        assert out.shape == ref.shape == (N, Cout, d_o, h_o, w_o)
        max_err = float(jnp.max(jnp.abs(out - ref)))
        if not jnp.allclose(out, ref, atol=2e-3, rtol=2e-3):
            raise SystemExit(f"mismatch (stride={stride}): max abs err {max_err:e}")
    print("KERNEL_OK")
</pallas_src>

<mosaic_0001>
module attributes {stable_mosaic.version = 11 : i64} {
  func.func @_conv_stats_kernel(%arg0: i32, %arg1: i32, %arg2: memref<1x256x108xbf16, #tpu.memory_space<vmem>>, %arg3: memref<108x128xbf16, #tpu.memory_space<vmem>>, %arg4: memref<1x256x128xf32, #tpu.memory_space<vmem>>, %arg5: memref<1x1x128xf32, #tpu.memory_space<vmem>>, %arg6: memref<1x1x128xf32, #tpu.memory_space<vmem>>) attributes {dimension_semantics = [#tpu.dimension_semantics<parallel>, #tpu.dimension_semantics<arbitrary>], iteration_bounds = array<i64: 2, 5>, scalar_prefetch = 0 : i64, scratch_operands = 0 : i64, tpu.core_type = #tpu.core_type<tc>, window_params = [{transform_indices = @transform_0, window_bounds = array<i64: 1, 256, 108>}, {pipeline_mode = #tpu.pipeline_mode<synchronous>, transform_indices = @transform_1, window_bounds = array<i64: 108, 128>}, {transform_indices = @transform_2, window_bounds = array<i64: 1, 256, 128>}, {transform_indices = @transform_3, window_bounds = array<i64: 1, 1, 128>}, {transform_indices = @transform_4, window_bounds = array<i64: 1, 1, 128>}]} {
    %c0_i32 = arith.constant 0 : i32
    %0 = arith.cmpi eq, %arg1, %c0_i32 : i32
    %1 = arith.extui %0 : i1 to i32
    %c0_i32_0 = arith.constant 0 : i32
    %2 = arith.cmpi ne, %1, %c0_i32_0 : i32
    scf.if %2 {
      %cst_22 = arith.constant 0.000000e+00 : f32
      %21 = vector.broadcast %cst_22 : f32 to vector<1x1x128xf32>
      %c0_23 = arith.constant 0 : index
      %c0_24 = arith.constant 0 : index
      %c0_25 = arith.constant 0 : index
      %22 = vector.load %arg5[%c0_23, %c0_24, %c0_25] : memref<1x1x128xf32, #tpu.memory_space<vmem>>, vector<1x1x128xf32>
      tpu.vector_store %arg5[%c0_23, %c0_24, %c0_25], %21 {strides = array<i32>} : memref<1x1x128xf32, #tpu.memory_space<vmem>>, vector<1x1x128xf32>,
      %cst_26 = arith.constant 0.000000e+00 : f32
      %23 = vector.broadcast %cst_26 : f32 to vector<1x1x128xf32>
      %c0_27 = arith.constant 0 : index
      %c0_28 = arith.constant 0 : index
      %c0_29 = arith.constant 0 : index
      %24 = vector.load %arg6[%c0_27, %c0_28, %c0_29] : memref<1x1x128xf32, #tpu.memory_space<vmem>>, vector<1x1x128xf32>
      tpu.vector_store %arg6[%c0_27, %c0_28, %c0_29], %23 {strides = array<i32>} : memref<1x1x128xf32, #tpu.memory_space<vmem>>, vector<1x1x128xf32>,
    } else {
    }
    %c0 = arith.constant 0 : index
    %c0_1 = arith.constant 0 : index
    %c0_2 = arith.constant 0 : index
    %3 = vector.load %arg2[%c0, %c0_1, %c0_2] : memref<1x256x108xbf16, #tpu.memory_space<vmem>>, vector<1x256x108xbf16>
    %4 = vector.shape_cast %3 : vector<1x256x108xbf16> to vector<256x108xbf16>
    %c0_3 = arith.constant 0 : index
    %c0_4 = arith.constant 0 : index
    %5 = vector.load %arg3[%c0_3, %c0_4] : memref<108x128xbf16, #tpu.memory_space<vmem>>, vector<108x128xbf16>
    %cst = arith.constant dense<0.000000e+00> : vector<256x128xf32>
    %6 = tpu.matmul %4, %5, %cst {dimension_numbers = #tpu.dot_dimension_numbers<[1], [0], [0], [1], [0, 0, 1, 1], [], []>} : vector<256x108xbf16>, vector<108x128xbf16>, vector<256x128xf32> -> vector<256x128xf32>
    %c0_5 = arith.constant 0 : index
    %c0_6 = arith.constant 0 : index
    %c0_7 = arith.constant 0 : index
    %7 = vector.load %arg4[%c0_5, %c0_6, %c0_7] : memref<1x256x128xf32, #tpu.memory_space<vmem>>, vector<1x256x128xf32>
    %8 = vector.shape_cast %7 : vector<1x256x128xf32> to vector<256x128xf32>
    %9 = vector.shape_cast %6 : vector<256x128xf32> to vector<1x256x128xf32>
    tpu.vector_store %arg4[%c0_5, %c0_6, %c0_7], %9 {strides = array<i32>} : memref<1x256x128xf32, #tpu.memory_space<vmem>>, vector<1x256x128xf32>,
    %c0_8 = arith.constant 0 : index
    %c0_9 = arith.constant 0 : index
    %c0_10 = arith.constant 0 : index
    %10 = vector.load %arg5[%c0_8, %c0_9, %c0_10] : memref<1x1x128xf32, #tpu.memory_space<vmem>>, vector<1x1x128xf32>
    %cst_11 = arith.constant dense<0.000000e+00> : vector<128xf32>
    %11 = vector.multi_reduction <add>, %6, %cst_11 [0] : vector<256x128xf32> to vector<128xf32>
    %12 = vector.shape_cast %11 : vector<128xf32> to vector<1x1x128xf32>
    %13 = arith.addf %10, %12 : vector<1x1x128xf32>
    %c0_12 = arith.constant 0 : index
    %c0_13 = arith.constant 0 : index
    %c0_14 = arith.constant 0 : index
    %14 = vector.load %arg5[%c0_12, %c0_13, %c0_14] : memref<1x1x128xf32, #tpu.memory_space<vmem>>, vector<1x1x128xf32>
    tpu.vector_store %arg5[%c0_12, %c0_13, %c0_14], %13 {strides = array<i32>} : memref<1x1x128xf32, #tpu.memory_space<vmem>>, vector<1x1x128xf32>,
    %c0_15 = arith.constant 0 : index
    %c0_16 = arith.constant 0 : index
    %c0_17 = arith.constant 0 : index
    %15 = vector.load %arg6[%c0_15, %c0_16, %c0_17] : memref<1x1x128xf32, #tpu.memory_space<vmem>>, vector<1x1x128xf32>
    %16 = arith.mulf %6, %6 : vector<256x128xf32>
    %cst_18 = arith.constant dense<0.000000e+00> : vector<128xf32>
    %17 = vector.multi_reduction <add>, %16, %cst_18 [0] : vector<256x128xf32> to vector<128xf32>
    %18 = vector.shape_cast %17 : vector<128xf32> to vector<1x1x128xf32>
    %19 = arith.addf %15, %18 : vector<1x1x128xf32>
    %c0_19 = arith.constant 0 : index
    %c0_20 = arith.constant 0 : index
    %c0_21 = arith.constant 0 : index
    %20 = vector.load %arg6[%c0_19, %c0_20, %c0_21] : memref<1x1x128xf32, #tpu.memory_space<vmem>>, vector<1x1x128xf32>
    tpu.vector_store %arg6[%c0_19, %c0_20, %c0_21], %19 {strides = array<i32>} : memref<1x1x128xf32, #tpu.memory_space<vmem>>, vector<1x1x128xf32>,
    return
  }
  func.func @transform_0(%arg0: i32, %arg1: i32) -> (i32, i32, i32) {
    %c0_i32 = arith.constant 0 : i32
    %c0_i32_0 = arith.constant 0 : i32
    return %arg0, %arg1, %c0_i32 : i32, i32, i32
  }
  func.func @transform_1(%arg0: i32, %arg1: i32) -> (i32, i32) {
    %c0_i32 = arith.constant 0 : i32
    %c0_i32_0 = arith.constant 0 : i32
    %c0_i32_1 = arith.constant 0 : i32
    return %c0_i32, %c0_i32_0 : i32, i32
  }
  func.func @transform_2(%arg0: i32, %arg1: i32) -> (i32, i32, i32) {
    %c0_i32 = arith.constant 0 : i32
    %c0_i32_0 = arith.constant 0 : i32
    return %arg0, %arg1, %c0_i32 : i32, i32, i32
  }
  func.func @transform_3(%arg0: i32, %arg1: i32) -> (i32, i32, i32) {
    %c0_i32 = arith.constant 0 : i32
    %c0_i32_0 = arith.constant 0 : i32
    %c0_i32_1 = arith.constant 0 : i32
    return %arg0, %c0_i32, %c0_i32_0 : i32, i32, i32
  }
  func.func @transform_4(%arg0: i32, %arg1: i32) -> (i32, i32, i32) {
    %c0_i32 = arith.constant 0 : i32
    %c0_i32_0 = arith.constant 0 : i32
    %c0_i32_1 = arith.constant 0 : i32
    return %arg0, %c0_i32, %c0_i32_0 : i32, i32, i32
  }
}

</mosaic_0001>

<bundles_post_ra>
// kernel: tpu_custom_call.1
= control target key start
LH: loop header
LB: loop body
LE: loop exit
PB: predicated region body
PF: predicated region fallthrough
CT: control target
= control target key end

     0   :  { %s1913_s0 = inlined_call_operand.vmem [shape: bf16[2,1280,108], index: 0, kind: input, shape index: {}]   ;;  %s1914_s1 = inlined_call_operand.hbm [shape: bf16[108,128], index: 1, kind: input, shape index: {}]   ;;  %s1915_s2 = inlined_call_operand.hbm [shape: f32[2,1280,128], index: 2, kind: output, shape index: {0}]   ;;  %s1916_s3 = inlined_call_operand.hbm [shape: f32[2,1,128], index: 3, kind: output, shape index: {1}]   ;;  %s1917_s4 = inlined_call_operand.hbm [shape: f32[2,1,128], index: 4, kind: output, shape index: {2}]  }
   0x1   :  { %1925 = sst [smem:[#allocation18_spill]] %s1914_s1 }
   0x2   :  { %10 = vsyncpa [#allocation3], 0 }
   0x3   :  { %11 = vsyncpa [#allocation4], 0 }
   0x4   :  { %13 = vsyncpa [#allocation4 + $0x1], 0 }
   0x5   :  { %14 = vsyncpa [#allocation7], 0 }
   0x6   :  { %16 = vsyncpa [#allocation7 + $0x1], 0  ;;  %s1455_s15 = smov 0   ;;  %s1457_s16 = smov 0  }
   0x7   :  { %s1459_s17 = smov 0   ;;  %s1461_s18 = smov 0  }
   0x8   :  { %s1463_s19 = smov 0   ;;  %s1465_s20 = smov 0  }
   0x9   :  { %s1467_s21 = smov 0   ;;  %s1469_s22 = smov 0  }
   0xa   :  { %s1471_s23 = smov 0   ;;  %s1473_s24 = smov 0  }
   0xb   :  { %s1475_s25 = smov 0  }
   0xc LB: > { %1926 = sst [smem:[#allocation12_spill]] %s1402_s20  ;;  %s1511_s26 = sadd.s32 4294967295, %s1422_s25   ;;  %s1422_s25 = sphi %s1475_s25, %s22_s25   ;;  %s1418_s24 = sphi %s1473_s24, %s1945_s24   ;;  %s1414_s23 = sphi %s1471_s23, %s1944_s23   ;;  %s1410_s22 = sphi %s1469_s22, %s1943_s22   ;;  %s1406_s21 = sphi %s1467_s21, %s1942_s21   ;;  %s1402_s20 = sphi %s1465_s20, %s1941_s20   ;;  %s1398_s19 = sphi %s1463_s19, %s1950_s19   ;;  %s1394_s18 = sphi %s1461_s18, %s1949_s18   ;;  %s1390_s17 = sphi %s1459_s17, %s1948_s17   ;;  %s1386_s16 = sphi %s1457_s16, %s1947_s16   ;;  %s1382_s15 = sphi %s1455_s15, %s1946_s15  }
   0xd   : > { %1927 = sst [smem:[#allocation13_spill]] %s1414_s23  ;;  %s1918_s27 = sadd.s32 4294967294, %s1422_s25  }
   0xe   : > { %1928 = sst [smem:[#allocation14_spill]] %s1418_s24  ;;  %s31_s28 = sadd.s32 1, %s1414_s23 }
   0xf   : > { %s34_s29 = sadd.s32 1, %s1418_s24  ;;  %p32_p0 = scmp.ge.s32.totalorder %s31_s28, 5 }
  0x10   : > { %s92_s30 = sadd.s32 1, %s1402_s20  ;;  %p102_p1 = scmp.ne.s32.totalorder %s1402_s20, %s1398_s19 }
  0x11   : > { %p103_p2 = scmp.eq.s32.totalorder %s1511_s26, 9  ;;  %s1952_s28 = smov (%p32_p0, %s31_s28), 0 }
  0x12   : > { %1929 = sst [smem:[#allocation15_spill]] %s1952_s28  ;;  %s1954_s29 = smov (!%p32_p0, %s34_s29), %s1418_s24 }
  0x13   : > { %s88_s5 = ssub.s32 %s1414_s23, %s1952_s28  ;;  %p1527_p3 = por %p103_p2, %p102_p1 }
  0x14   : > { %p36_p4 = scmp.ge.s32.totalorder %s1954_s29, 2  ;;  %p108_p5 = scmp.ne.s32.totalorder %s1398_s19, %s1394_s18 }
  0x15   : > { %p1535_p6 = scmp.eq.s32.totalorder %s1918_s27, 9  ;;  %s118_s8 = sadd.s32 1, %s1390_s17 }
  0x16   : > { %s1956_s29 = smov (%p36_p4, %s1954_s29), 0  ;;  %p128_p8 = scmp.ne.s32.totalorder %s1390_s17, %s1386_s16 }
  0x17   : > { %1932 = sst [smem:[#allocation16_spill]] %s1956_s29  ;;  %p1544_p7 = por %p1535_p6, %p108_p5 }
  0x18   : > { %s87_s10 = ssub.s32 %s1418_s24, %s1956_s29  ;;  %p134_p9 = scmp.ne.s32.totalorder %s1386_s16, %s1382_s15 }
  0x19   : > { %s89_s11 = sor.u32 %s88_s5, %s87_s10  ;;  %p116_p10 = scmp.eq.s32.totalorder %s87_s10, 0 }
  0x1a   : > { %p90_p11 = scmp.eq.s32.totalorder %s89_s11, 0  ;;  %p1556_p12 = por %p128_p8, %p103_p2 }
  0x1b   : > { %s1561_s13 = scalar_select %p116_p10, %s1390_s17, %s118_s8  }
  0x1c   : > { %s1564_s14 = scalar_select %p90_p11, %s1402_s20, %s92_s30  }
  0x1d   : > { %p1568_p13 = por %p134_p9, %p1535_p6  ;;  %p921_p0 = scmp.ge.s32.totalorder %s1422_s25, 1 }
  0x1e   : > { %1935 = sst [smem:[#allocation17_spill]] %s1564_s14  ;;  %p168_p1 = scmp.lt.s32.totalorder %s1422_s25, 11 }
  0x1f   : > { %s1937_s1 = sld [smem:[#allocation18_spill]]  ;;  %p1113_p2 = scmp.eq.s32.totalorder %s1511_s26, 0 }
  0x20   : > { %p169_p4 = pnand %p921_p0, %p168_p1  ;;  %s1424_s11 = smov [#allocation2]  }
  0x21   : > { %s181_s8 = sshll.u32 %s1424_s11, 4  ;;  %s1425_s30 = smov 64   ;;  %s182_s8 = int_to_ptr.vmem [resolvable:$true] %s181_s8 }
  0x22   : > { %p1099_p5 = pneg %p169_p4  ;;  %s1426_s7 = smov 4  }
  0x23   : > { %210 = sbr.rel (%p169_p4) target bundleno = 350 (0x15e), region = 28 }
  0x24   : > { %p1100_p8 = pnand %p1113_p2, %p1099_p5 }
  0x25   : > { %s179_s10 = sshll.u32 %s1937_s1, 4  ;;  %s180_s10 = int_to_ptr.hbm [resolvable:$true] %s179_s10 }
  0x26   : > { %1102 = dma.hbm_to_vmem [thread:$0]  (!%p1100_p8), %s180_s10, 896, %s182_s8, [#allocation3], %s1425_s30, %s1425_s30, %s1426_s7  }
  0x28   : > { %1369 = dma.done.wait (%p1113_p2), [#allocation3], 896  }
  0x29   : > { %1371 = vsyncadd (%p1113_p2), [#allocation3], 4294966400  ;;  %s1924_s15 = sand.u32 1, %s1398_s19   ;;  %s241_s5 = sand.u32 1, %s1386_s16  }
  0x2a   : > { %s926_s1 = sshll.u32 %s1924_s15, 8  ;;  %s1583_s29 = sshll.u32 %s1406_s21, 5 }
  0x2b   : > { %p250_p6 = scmp.lt.s32.totalorder %s1410_s22, 1  ;;  %p252_p9 = scmp.lt.s32.totalorder %s1583_s29, 159 }
  0x2c   : > { %s1594_s14 = scalar_lea.vmem [#allocation5], %s926_s1  ;;  %s1596_s20 = scalar_lea.vmem [#allocation6], %s241_s5 }
  0x2d   : > { %s251_s10 = scalar_select %p250_p6, %s1410_s22, 1 }
  0x2e   : > { %s253_s11 = scalar_select %p252_p9, %s1583_s29, 159 }
  0x2f   : > { %s1087_s8 = smul.u32 160, %s251_s10  ;;  %s1598_s15 = scalar_lea.vmem [#allocation8], %s241_s5 }
  0x30   : > { %p929_p10 = scmp.ne.s32.totalorder %s1406_s21, 0 }
  0x31   : > { %s255_s30 = sadd.s32 %s1087_s8, %s253_s11 }
  0x32   : > { %s928_s7 = sshll.u32 %s255_s30, 2  ;;  %264 = sbr.rel (%p929_p10) target bundleno = 58 (0x3a), region = 36 }
  0x33   : > { %s1592_s23 = scalar_lea.vmem %s1913_s0, %s928_s7 }
  0x37   : > { %v1427_v0 = vmov 0.0  }
  0x38   : > { %265 = vst [vmem:[%s1596_s20] sm:$0x1] %v1427_v0 }
  0x39   : > { %266 = vst [vmem:[%s1598_s15] sm:$0x1] %v1427_v0 }
  0x3a PF: > { %v1020_v1 = vld [vmem:[#allocation2 + $0x30] sm:$0xf]  ;;  %v1065_v2 = vld [vmem:[#allocation2 + $0x30] sm:$0x30]  ;;  %vm483_vm0 = vcmask 1045504   ;;  %v1064_v5 = vld [vmem:[#allocation2 + $0x28] sm:$0xff] }
  0x3b   : > { %v1021_v3 = vor.u32 %v1065_v2, %v1020_v1  ;;  %v1063_v6 = vld [vmem:[#allocation2 + $0x20] sm:$0xff]  ;;  %v1062_v7 = vld [vmem:[#allocation2 + $0x18] sm:$0xff]  ;;  %v1061_v8 = vld [vmem:[#allocation2 + $0x10] sm:$0xff]  ;;  %vm434_vm1 = vcmask 883712   ;;  %s1088_s1 = smul.u32 160, %s1410_s22  ;;  %s743_s5 = sshll.u32 %s1594_s14, 4  ;;  %s1743_s5 = int_to_ptr.vmem [resolvable:$true] %s743_s5 }
  0x3c   : > { %v1060_v9 = vld [vmem:[#allocation2 + $0x8] sm:$0xff]  ;;  %v1059_v10 = vld [vmem:[#allocation2] sm:$0xff]  ;;  %v1045_v19 = vld [vmem:[%s1592_s23 + $0x10] sm:$0xff]  ;;  %s1938_s11 = sand.u32 1, %s1398_s19  }
  0x3d   : > { %v485_v4 = vsel %vm483_vm0, %v1021_v3, 0  ;;  %v1043_v11 = vld [vmem:[%s1592_s23] sm:$0xff]  ;;  %v1044_v15 = vld [vmem:[%s1592_s23 + $0x8] sm:$0xff]  ;;  %v1049_v20 = vld [vmem:[%s1592_s23 + $0x30] sm:$0xff]  ;;  %s740_s21 = sadd.s32 %s1088_s1, %s1583_s29  ;;  %s721_s8 = scalar_lea.sflag [#allocation4], %s1938_s11 }
  0x3e   : > { %488 = vmatpush.bf16.msra.mxu0 %v485_v4  ;;  %1066 = vmatpush.bf16.msra.mxu1 %v485_v4  ;;  %v1047_v12 = vld [vmem:[%s1592_s23 + $0x20] sm:$0xff]  ;;  %v1048_v16 = vld [vmem:[%s1592_s23 + $0x28] sm:$0xff]  ;;  %v1053_v21 = vld [vmem:[%s1592_s23 + $0x50] sm:$0xff] }
  0x3f   : > { %1067 = vmatpush.bf16.msra.mxu2 %v485_v4  ;;  %1068 = vmatpush.bf16.msra.mxu3 %v485_v4  ;;  %v1051_v13 = vld [vmem:[%s1592_s23 + $0x40] sm:$0xff]  ;;  %v1052_v17 = vld [vmem:[%s1592_s23 + $0x48] sm:$0xff]  ;;  %v1057_v22 = vld [vmem:[%s1592_s23 + $0x70] sm:$0xff] }
  0x40   : > { %v1055_v14 = vld [vmem:[%s1592_s23 + $0x60] sm:$0xff]  ;;  %v1056_v18 = vld [vmem:[%s1592_s23 + $0x68] sm:$0xff]  ;;  %v1046_v23 = vld [vmem:[%s1592_s23 + $0x18] sm:$0xff] }
  0x41   : > { %v1050_v24 = vld [vmem:[%s1592_s23 + $0x38] sm:$0xff] }
  0x42   : > { %489 = vmatpush.bf16.msra.mxu0 %v1064_v5  ;;  %1069 = vmatpush.bf16.msra.mxu1 %v1064_v5  ;;  %v1054_v25 = vld [vmem:[%s1592_s23 + $0x58] sm:$0xff] }
  0x43   : > { %1070 = vmatpush.bf16.msra.mxu2 %v1064_v5  ;;  %1071 = vmatpush.bf16.msra.mxu3 %v1064_v5  ;;  %v1058_v26 = vld [vmem:[%s1592_s23 + $0x78] sm:$0xff]  ;;  %s1040_s23 = sshll.u32 %s740_s21, 3 }
  0x44   : > { %s742_s29 = scalar_lea.hbm %s1915_s2, %s1040_s23  ;;  %s1260_s23 = scalar_lea.hbm %s1915_s2, 2560 }
  0x45   : > { %s745_s10 = sshll.u32 %s742_s29, 4  ;;  %s1745_s10 = int_to_ptr.hbm [resolvable:$true] %s745_s10 }
  0x46   : > { %490 = vmatpush.bf16.msra.mxu0 %v1063_v6  ;;  %1072 = vmatpush.bf16.msra.mxu1 %v1063_v6  ;;  %s1254_s30 = sshra.s32 %s1745_s10, 4  ;;  %s1255_s30 = int_to_ptr.hbm [resolvable:$true] %s1254_s30 }
  0x47   : > { %1073 = vmatpush.bf16.msra.mxu2 %v1063_v6  ;;  %1074 = vmatpush.bf16.msra.mxu3 %v1063_v6  ;;  %s1256_s7 = scalar_lea.hbm %s1255_s30, 256  ;;  %p1261_p4 = scmp.lt.s32.totalorder %s1255_s30, %s1915_s2 }
  0x48   : > { %p1257_p11 = scmp.ne.s32.totalorder %s1255_s30, %s1256_s7  ;;  %p1262_p2 = scmp.lt.s32.totalorder %s1260_s23, %s1256_s7 }
  0x4a   : > { %491 = vmatpush.bf16.msra.mxu0 %v1062_v7  ;;  %1075 = vmatpush.bf16.msra.mxu1 %v1062_v7  ;;  %p1258_p0 = pnand %p1257_p11, %p1527_p3  ;;  %p1263_p5 = por %p1262_p2, %p1261_p4 }
  0x4b   : > { %1076 = vmatpush.bf16.msra.mxu2 %v1062_v7  ;;  %1077 = vmatpush.bf16.msra.mxu3 %v1062_v7 }
  0x4c   : > { %p1259_p1 = pneg %p1258_p0 }
  0x4e   : > { %492 = vmatpush.bf16.msra.mxu0 %v1061_v8  ;;  %1078 = vmatpush.bf16.msra.mxu1 %v1061_v8  ;;  %p1264_p8 = pnand %p1263_p5, %p1259_p1 }
  0x4f   : > { %1079 = vmatpush.bf16.msra.mxu2 %v1061_v8  ;;  %1080 = vmatpush.bf16.msra.mxu3 %v1061_v8 }
  0x52   : > { %493 = vmatpush.bf16.msra.mxu0 %v1060_v9  ;;  %1081 = vmatpush.bf16.msra.mxu1 %v1060_v9 }
  0x53   : > { %1082 = vmatpush.bf16.msra.mxu2 %v1060_v9  ;;  %1083 = vmatpush.bf16.msra.mxu3 %v1060_v9 }
  0x56   : > { %494 = vmatpush.bf16.msra.mxu0 %v1059_v10  ;;  %1084 = vmatpush.bf16.msra.mxu1 %v1059_v10 }
  0x57   : > { %1085 = vmatpush.bf16.msra.mxu2 %v1059_v10  ;;  %1086 = vmatpush.bf16.msra.mxu3 %v1059_v10 }
  0x59   : > { %1022 = vmatmul.msk.bf16.vlgmr.msra.gmra.mxu0 %vm434_vm1, %v1043_v11  ;;  %1026 = vmatmul.msk.bf16.vlgmr.msra.gmra.mxu1 %vm434_vm1, %v1047_v12 }
  0x5a   : > { %1030 = vmatmul.msk.bf16.vlgmr.msra.gmra.mxu2 %vm434_vm1, %v1051_v13  ;;  %1034 = vmatmul.msk.bf16.vlgmr.msra.gmra.mxu3 %vm434_vm1, %v1055_v14 }
  0x69   : > { %1023 = vmatmul.msk.bf16.gmra.mxu0 %vm434_vm1, %v1044_v15  ;;  %1027 = vmatmul.msk.bf16.gmra.mxu1 %vm434_vm1, %v1048_v16 }
  0x6a   : > { %1031 = vmatmul.msk.bf16.gmra.mxu2 %vm434_vm1, %v1052_v17  ;;  %1035 = vmatmul.msk.bf16.gmra.mxu3 %vm434_vm1, %v1056_v18 }
  0x79   : > { %1024 = vmatmul.msk.bf16.gmra.mxu0 %vm434_vm1, %v1045_v19  ;;  %1028 = vmatmul.msk.bf16.gmra.mxu1 %vm434_vm1, %v1049_v20 }
  0x7a   : > { %1032 = vmatmul.msk.bf16.gmra.mxu2 %vm434_vm1, %v1053_v21  ;;  %1036 = vmatmul.msk.bf16.gmra.mxu3 %vm434_vm1, %v1057_v22 }
  0x89   : > { %1025 = vmatmul.msk.bf16.gmra.mxu0 %vm434_vm1, %v1046_v23  ;;  %1029 = vmatmul.msk.bf16.gmra.mxu1 %vm434_vm1, %v1050_v24 }
  0x8a   : > { %1033 = vmatmul.msk.bf16.gmra.mxu2 %vm434_vm1, %v1054_v25  ;;  %1037 = vmatmul.msk.bf16.gmra.mxu3 %vm434_vm1, %v1058_v26 }
  0xd6   : > { %v496_v27 = vpop.f32.mrf.mxu0  ;;  %v1635_v28 = vpop.f32.mrf.mxu1 }
  0xd7   : > { %576 = vst [vmem:[%s1594_s14] sm:$0xff] %v496_v27  ;;  %v649_v50 = vmul.f32 %v496_v27, %v496_v27  ;;  %v657_v14 = vmul.f32 %v1635_v28, %v1635_v28 }
  0xd8   : > { %584 = vst [vmem:[%s1594_s14 + $0x40] sm:$0xff] %v1635_v28 }
  0xdd   : > { %v1640_v29 = vpop.f32.mrf.mxu2  ;;  %v1647_v32 = vpop.f32.mrf.mxu3 }
  0xde   : > { %v498_v30 = vpop.f32.mrf.mxu0  ;;  %v1642_v31 = vpop.f32.mrf.mxu1  ;;  %592 = vst [vmem:[%s1594_s14 + $0x80] sm:$0xff] %v1640_v29 }
  0xdf   : > { %577 = vst [vmem:[%s1594_s14 + $0x8] sm:$0xff] %v498_v30  ;;  %v650_v49 = vmul.f32 %v498_v30, %v498_v30  ;;  %v609_v51 = vadd.f32 %v498_v30, %v496_v27  ;;  %v658_v17 = vmul.f32 %v1642_v31, %v1642_v31 }
  0xe0   : > { %585 = vst [vmem:[%s1594_s14 + $0x48] sm:$0xff] %v1642_v31 }
  0xe1   : > { %600 = vst [vmem:[%s1594_s14 + $0xc0] sm:$0xff] %v1647_v32  ;;  %v681_v53 = vadd.f32 %v650_v49, %v649_v50 }
  0xe5   : > { %v1653_v33 = vpop.f32.mrf.mxu2  ;;  %v1660_v36 = vpop.f32.mrf.mxu3 }
  0xe6   : > { %v501_v34 = vpop.f32.mrf.mxu0  ;;  %v1655_v35 = vpop.f32.mrf.mxu1  ;;  %593 = vst [vmem:[%s1594_s14 + $0x88] sm:$0xff] %v1653_v33 }
  0xe7   : > { %578 = vst [vmem:[%s1594_s14 + $0x10] sm:$0xff] %v501_v34  ;;  %v651_v52 = vmul.f32 %v501_v34, %v501_v34  ;;  %v610_v54 = vadd.f32 %v609_v51, %v501_v34  ;;  %v659_v20 = vmul.f32 %v1655_v35, %v1655_v35 }
  0xe8   : > { %586 = vst [vmem:[%s1594_s14 + $0x50] sm:$0xff] %v1655_v35 }
  0xe9   : > { %601 = vst [vmem:[%s1594_s14 + $0xc8] sm:$0xff] %v1660_v36  ;;  %v682_v59 = vadd.f32 %v681_v53, %v651_v52 }
  0xed   : > { %v1666_v37 = vpop.f32.mrf.mxu2  ;;  %v1673_v40 = vpop.f32.mrf.mxu3 }
  0xee   : > { %v503_v38 = vpop.f32.mrf.mxu0  ;;  %v1668_v39 = vpop.f32.mrf.mxu1  ;;  %594 = vst [vmem:[%s1594_s14 + $0x90] sm:$0xff] %v1666_v37 }
  0xef   : > { %579 = vst [vmem:[%s1594_s14 + $0x18] sm:$0xff] %v503_v38  ;;  %v652_v55 = vmul.f32 %v503_v38, %v503_v38  ;;  %v611_v60 = vadd.f32 %v610_v54, %v503_v38  ;;  %v660_v24 = vmul.f32 %v1668_v39, %v1668_v39 }
  0xf0   : > { %587 = vst [vmem:[%s1594_s14 + $0x58] sm:$0xff] %v1668_v39 }
  0xf1   : > { %602 = vst [vmem:[%s1594_s14 + $0xd0] sm:$0xff] %v1673_v40  ;;  %v683_v63 = vadd.f32 %v682_v59, %v652_v55 }
  0xf5   : > { %v1679_v41 = vpop.f32.mrf.mxu2  ;;  %v1686_v44 = vpop.f32.mrf.mxu3 }
  0xf6   : > { %v506_v42 = vpop.f32.mrf.mxu0  ;;  %v1681_v43 = vpop.f32.mrf.mxu1  ;;  %595 = vst [vmem:[%s1594_s14 + $0x98] sm:$0xff] %v1679_v41 }
  0xf7   : > { %580 = vst [vmem:[%s1594_s14 + $0x20] sm:$0xff] %v506_v42  ;;  %v653_v61 = vmul.f32 %v506_v42, %v506_v42  ;;  %v612_v0 = vadd.f32 %v611_v60, %v506_v42 }
  0xf8   : > { %588 = vst [vmem:[%s1594_s14 + $0x60] sm:$0xff] %v1681_v43 }
  0xf9   : > { %603 = vst [vmem:[%s1594_s14 + $0xd8] sm:$0xff] %v1686_v44  ;;  %v684_v2 = vadd.f32 %v683_v63, %v653_v61 }
  0xfd   : > { %v1692_v45 = vpop.f32.mrf.mxu2  ;;  %v1699_v48 = vpop.f32.mrf.mxu3 }
  0xfe   : > { %v508_v46 = vpop.f32.mrf.mxu0  ;;  %v1694_v47 = vpop.f32.mrf.mxu1  ;;  %596 = vst [vmem:[%s1594_s14 + $0xa0] sm:$0xff] %v1692_v45 }
  0xff   : > { %581 = vst [vmem:[%s1594_s14 + $0x28] sm:$0xff] %v508_v46  ;;  %v654_v1 = vmul.f32 %v508_v46, %v508_v46  ;;  %v613_v3 = vadd.f32 %v612_v0, %v508_v46 }
 0x100   : > { %589 = vst [vmem:[%s1594_s14 + $0x68] sm:$0xff] %v1694_v47 }
 0x101   : > { %604 = vst [vmem:[%s1594_s14 + $0xe0] sm:$0xff] %v1699_v48  ;;  %v685_v5 = vadd.f32 %v684_v2, %v654_v1 }
 0x105   : > { %v1705_v56 = vpop.f32.mrf.mxu2  ;;  %v1713_v62 = vpop.f32.mrf.mxu3 }
 0x106   : > { %v511_v57 = vpop.f32.mrf.mxu0  ;;  %v1708_v58 = vpop.f32.mrf.mxu1  ;;  %597 = vst [vmem:[%s1594_s14 + $0xa8] sm:$0xff] %v1705_v56 }
 0x107   : > { %582 = vst [vmem:[%s1594_s14 + $0x30] sm:$0xff] %v511_v57  ;;  %v655_v4 = vmul.f32 %v511_v57, %v511_v57  ;;  %v614_v6 = vadd.f32 %v613_v3, %v511_v57 }
 0x108   : > { %590 = vst [vmem:[%s1594_s14 + $0x70] sm:$0xff] %v1708_v58 }
 0x109   : > { %605 = vst [vmem:[%s1594_s14 + $0xe8] sm:$0xff] %v1713_v62  ;;  %v686_v10 = vadd.f32 %v685_v5, %v655_v4 }
 0x10d   : > { %v1720_v7 = vpop.f32.mrf.mxu2  ;;  %v1725_v13 = vpop.f32.mrf.mxu3 }
 0x10e   : > { %v513_v8 = vpop.f32.mrf.mxu0  ;;  %v533_v9 = vpop.f32.mrf.mxu1  ;;  %598 = vst [vmem:[%s1594_s14 + $0xb0] sm:$0xff] %v1720_v7 }
 0x10f   : > { %583 = vst [vmem:[%s1594_s14 + $0x38] sm:$0xff] %v513_v8  ;;  %v615_v11 = vadd.f32 %v614_v6, %v513_v8  ;;  %v656_v12 = vmul.f32 %v513_v8, %v513_v8 }
 0x110   : > { %591 = vst [vmem:[%s1594_s14 + $0x78] sm:$0xff] %v533_v9 }
 0x111   : > { %v616_v15 = vadd.f32 %v615_v11, %v1635_v28  ;;  %v687_v16 = vadd.f32 %v686_v10, %v656_v12  ;;  %606 = vst [vmem:[%s1594_s14 + $0xf0] sm:$0xff] %v1725_v13  ;;  %v661_v28 = vmul.f32 %v1681_v43, %v1681_v43 }
 0x113   : > { %v617_v18 = vadd.f32 %v616_v15, %v1642_v31  ;;  %v688_v19 = vadd.f32 %v687_v16, %v657_v14 }
 0x115   : > { %v618_v21 = vadd.f32 %v617_v18, %v1655_v35  ;;  %v689_v22 = vadd.f32 %v688_v19, %v658_v17  ;;  %v553_v23 = vpop.f32.mrf.mxu2  ;;  %v1751_v27 = vpop.f32.mrf.mxu3 }
 0x116   : > { %599 = vst [vmem:[%s1594_s14 + $0xb8] sm:$0xff] %v553_v23 }
 0x117   : > { %v690_v25 = vadd.f32 %v689_v22, %v659_v20  ;;  %v619_v26 = vadd.f32 %v618_v21, %v1668_v39  ;;  %607 = vst [vmem:[%s1594_s14 + $0xf8] sm:$0xff] %v1751_v27 }
 0x119   : > { %v620_v30 = vadd.f32 %v619_v26, %v1681_v43  ;;  %v691_v31 = vadd.f32 %v690_v25, %v660_v24 }
 0x11a   : > { %1267 = shalt.err (!%p1264_p8)
}
 0x11b   : > { %s1428_s28 = smov 128   ;;  %s1429_s29 = smov 8   ;;  %v662_v34 = vmul.f32 %v1694_v47, %v1694_v47  ;;  %v621_v35 = vadd.f32 %v620_v30, %v1694_v47  ;;  %v692_v38 = vadd.f32 %v691_v31, %v661_v28  ;;  %v663_v42 = vmul.f32 %v1708_v58, %v1708_v58 }
 0x11c   : > { %1093 = dma.vmem_to_hbm [thread:$0]  (%p1527_p3), %s1743_s5, 4096, %s1745_s10, %s721_s8, %s1428_s28, %s1428_s28, %s1429_s29   ;;  %v664_v50 = vmul.f32 %v533_v9, %v533_v9  ;;  %v665_v51 = vmul.f32 %v1640_v29, %v1640_v29  ;;  %v666_v54 = vmul.f32 %v1653_v33, %v1653_v33  ;;  %v667_v57 = vmul.f32 %v1666_v37, %v1666_v37 }
 0x11d   : > { %v622_v39 = vadd.f32 %v621_v35, %v1708_v58  ;;  %v693_v43 = vadd.f32 %v692_v38, %v662_v34  ;;  %v668_v60 = vmul.f32 %v1679_v41, %v1679_v41  ;;  %v670_v2 = vmul.f32 %v1705_v56, %v1705_v56  ;;  %s757_s10 = scalar_lea.hbm %s1916_s3, %s1410_s22  ;;  %s725_s11 = sand.u32 1, %s1511_s26  }
 0x11e   : > { %v671_v5 = vmul.f32 %v1720_v7, %v1720_v7  ;;  %v672_v8 = vmul.f32 %v553_v23, %v553_v23  ;;  %v674_v11 = vmul.f32 %v1660_v36, %v1660_v36  ;;  %v675_v14 = vmul.f32 %v1673_v40, %v1673_v40  ;;  %s770_s7 = scalar_lea.hbm %s1917_s4, %s1410_s22  ;;  %s759_s1 = sshll.u32 %s1596_s20, 4  ;;  %s760_s1 = int_to_ptr.vmem [resolvable:$true] %s759_s1 }
 0x11f   : > { %v694_v46 = vadd.f32 %v693_v43, %v663_v42  ;;  %v623_v49 = vadd.f32 %v622_v39, %v533_v9  ;;  %v673_v9 = vmul.f32 %v1647_v32, %v1647_v32  ;;  %v676_v16 = vmul.f32 %v1686_v44, %v1686_v44  ;;  %s1835_s21 = sshll.u32 %s757_s10, 4  ;;  %s772_s23 = sshll.u32 %s1598_s15, 4  ;;  %s762_s21 = int_to_ptr.hbm [resolvable:$true] %s1835_s21  ;;  %s1843_s23 = int_to_ptr.vmem [resolvable:$true] %s772_s23 }
 0x120   : > { %v678_v21 = vmul.f32 %v1713_v62, %v1713_v62  ;;  %v680_v25 = vmul.f32 %v1751_v27, %v1751_v27  ;;  %s1839_s14 = sshll.u32 %s770_s7, 4  ;;  %s726_s22 = scalar_lea.sflag [#allocation7], %s725_s11  ;;  %s775_s14 = int_to_ptr.hbm [resolvable:$true] %s1839_s14 }
 0x121   : > { %v624_v52 = vadd.f32 %v623_v49, %v1640_v29  ;;  %v695_v53 = vadd.f32 %v694_v46, %v664_v50  ;;  %v669_v29 = vmul.f32 %v1692_v45, %v1692_v45  ;;  %v648_v46 = vld [vmem:[%s1598_s15] sm:$0x1]  ;;  %s1282_s26 = sshra.s32 %s762_s21, 4  ;;  %s1288_s6 = scalar_lea.hbm %s1916_s3, 2  ;;  %s1283_s26 = int_to_ptr.hbm [resolvable:$true] %s1282_s26 }
 0x122   : > { %s1284_s24 = scalar_lea.hbm %s1283_s26, 1  ;;  %p1289_p10 = scmp.lt.s32.totalorder %s1283_s26, %s1916_s3 }
 0x123   : > { %v625_v47 = vadd.f32 %v624_v52, %v1653_v33  ;;  %v696_v55 = vadd.f32 %v695_v53, %v665_v51  ;;  %p1285_p3 = scmp.ne.s32.totalorder %s1283_s26, %s1284_s24  ;;  %p1290_p11 = scmp.lt.s32.totalorder %s1288_s6, %s1284_s24 }
 0x125   : > { %v626_v58 = vadd.f32 %v625_v47, %v1666_v37  ;;  %v697_v59 = vadd.f32 %v696_v55, %v666_v54  ;;  %p1286_p6 = pnand %p1285_p3, %p1556_p12  ;;  %p1291_p0 = por %p1290_p11, %p1289_p10 }
 0x127   : > { %v698_v61 = vadd.f32 %v697_v59, %v667_v57  ;;  %v627_v63 = vadd.f32 %v626_v58, %v1679_v41  ;;  %p1287_p9 = pneg %p1286_p6 }
 0x129   : > { %v628_v0 = vadd.f32 %v627_v63, %v1692_v45  ;;  %v699_v1 = vadd.f32 %v698_v61, %v668_v60  ;;  %p1292_p1 = pnand %p1291_p0, %p1287_p9 }
 0x12b   : > { %v629_v33 = vadd.f32 %v628_v0, %v1705_v56  ;;  %v700_v3 = vadd.f32 %v699_v1, %v669_v29 }
 0x12d   : > { %v701_v37 = vadd.f32 %v700_v3, %v670_v2  ;;  %v630_v4 = vadd.f32 %v629_v33, %v1720_v7 }
 0x12f   : > { %v702_v6 = vadd.f32 %v701_v37, %v671_v5  ;;  %v631_v41 = vadd.f32 %v630_v4, %v553_v23 }
 0x131   : > { %v632_v45 = vadd.f32 %v631_v41, %v1647_v32  ;;  %v703_v10 = vadd.f32 %v702_v6, %v672_v8  ;;  %v677_v32 = vmul.f32 %v1699_v48, %v1699_v48 }
 0x133   : > { %v633_v56 = vadd.f32 %v632_v45, %v1660_v36  ;;  %v704_v12 = vadd.f32 %v703_v10, %v673_v9 }
 0x135   : > { %v634_v7 = vadd.f32 %v633_v56, %v1673_v40  ;;  %v705_v15 = vadd.f32 %v704_v12, %v674_v11 }
 0x137   : > { %v706_v17 = vadd.f32 %v705_v15, %v675_v14  ;;  %v635_v18 = vadd.f32 %v634_v7, %v1686_v44  ;;  %v679_v44 = vmul.f32 %v1725_v13, %v1725_v13 }
 0x139   : > { %v636_v19 = vadd.f32 %v635_v18, %v1699_v48  ;;  %v707_v20 = vadd.f32 %v706_v17, %v676_v16 }
 0x13b   : > { %v637_v36 = vadd.f32 %v636_v19, %v1713_v62  ;;  %v708_v40 = vadd.f32 %v707_v20, %v677_v32 }
 0x13d   : > { %v709_v22 = vadd.f32 %v708_v40, %v678_v21  ;;  %v638_v23 = vadd.f32 %v637_v36, %v1725_v13 }
 0x13f   : > { %v710_v24 = vadd.f32 %v709_v22, %v679_v44  ;;  %v639_v48 = vadd.f32 %v638_v23, %v1751_v27  ;;  %v608_v27 = vld [vmem:[%s1596_s20] sm:$0x1] }
 0x141   : > { %v640_v26 = vrot.slane %v639_v48, 4  ;;  %v711_v62 = vadd.f32 %v710_v24, %v680_v25 }
 0x143   : > { %v641_v28 = vadd.f32 %v640_v26, %v639_v48  ;;  %v712_v30 = vrot.slane %v711_v62, 4 }
 0x145   : > { %v642_v31 = vrot.slane %v641_v28, 2  ;;  %v713_v34 = vadd.f32 %v712_v30, %v711_v62 }
 0x147   : > { %v643_v35 = vadd.f32 %v642_v31, %v641_v28  ;;  %v714_v38 = vrot.slane %v713_v34, 2 }
 0x149   : > { %v644_v13 = vrot.slane %v643_v35, 1  ;;  %v715_v39 = vadd.f32 %v714_v38, %v713_v34 }
 0x14b   : > { %v716_v42 = vrot.slane %v715_v39, 1  ;;  %v645_v43 = vadd.f32 %v644_v13, %v643_v35 }
 0x14d   : > { %v646_v49 = vadd.f32 %v645_v43, %v608_v27  ;;  %v717_v50 = vadd.f32 %v716_v42, %v715_v39 }
 0x14f   : > { %647 = vst [vmem:[%s1596_s20] sm:$0x1] %v646_v49  ;;  %v718_v51 = vadd.f32 %v717_v50, %v648_v46 }
 0x150   : > { %1295 = shalt.err (!%p1292_p1)
}
 0x151   : > { %1094 = dma.vmem_to_hbm [thread:$0]  (%p1556_p12), %s760_s1, 16, %s762_s21, %s726_s22   ;;  %719 = vst [vmem:[%s1598_s15] sm:$0x1] %v718_v51 }
 0x152   : > { %s1310_s20 = sshra.s32 %s775_s14, 4  ;;  %s1316_s7 = scalar_lea.hbm %s1917_s4, 2  ;;  %s1311_s20 = int_to_ptr.hbm [resolvable:$true] %s1310_s20 }
 0x153   : > { %s1312_s11 = scalar_lea.hbm %s1311_s20, 1  ;;  %p1317_p8 = scmp.lt.s32.totalorder %s1311_s20, %s1917_s4 }
 0x154   : > { %p1313_p4 = scmp.ne.s32.totalorder %s1311_s20, %s1312_s11  ;;  %p1318_p3 = scmp.lt.s32.totalorder %s1316_s7, %s1312_s11 }
 0x156   : > { %p1314_p2 = pnand %p1313_p4, %p1556_p12  ;;  %p1319_p6 = por %p1318_p3, %p1317_p8 }
 0x158   : > { %p1315_p5 = pneg %p1314_p2 }
 0x15a   : > { %p1320_p9 = pnand %p1319_p6, %p1315_p5 }
 0x15c   : > { %1323 = shalt.err (!%p1320_p9)
}
 0x15d   : > { %1095 = dma.vmem_to_hbm [thread:$0]  (%p1556_p12), %s1843_s23, 16, %s775_s14, %s726_s22  }
 0x15e PF: > { %p1115_p10 = scmp.ge.s32.totalorder %s1422_s25, 2  ;;  %s786_s15 = sand.u32 1, %s1394_s18  }
 0x15f   : > { %s787_s1 = scalar_lea.sflag [#allocation4], %s786_s15 }
 0x160   : > { %p1104_p11 = pnand %p1115_p10, %p1544_p7 }
 0x162   : > { %p1105_p0 = pneg %p1104_p11 }
 0x164   : > { %1373 = dma.done.wait (%p1105_p0), %s787_s1, 4096  }
 0x165   : > { %1375 = vsyncadd (%p1105_p0), %s787_s1, 4294963200  ;;  %s1939_s21 = sadd.s32 4294967294, %s1422_s25   ;;  %p1107_p1 = pnand %p1115_p10, %p1568_p13 }
 0x166   : > { %s796_s12 = sand.u32 1, %s1939_s21  }
 0x167   : > { %p1108_p4 = pneg %p1107_p1  ;;  %s797_s23 = scalar_lea.sflag [#allocation7], %s796_s12 }
 0x169   : > { %1377 = dma.done.wait (%p1108_p4), %s797_s23, 32  }
 0x16a   : > { %1379 = vsyncadd (%p1108_p4), %s797_s23, 4294967264  ;;  %s22_s25 = sadd.s32 1, %s1422_s25   ;;  %s1940_s9 = sld [smem:[#allocation12_spill]] }
 0x16b   : > { %p19_p12 = scmp.ge.s32.totalorder %s22_s25, 12   ;;  %s1941_s20 = sld [smem:[#allocation17_spill]] }
 0x16c   : > { %s1942_s21 = sld [smem:[#allocation13_spill]]  ;;  %s1946_s15 = smov %s1386_s16 }
 0x16d   : > { %s1943_s22 = sld [smem:[#allocation14_spill]]  ;;  %s1947_s16 = smov %s1390_s17 }
 0x16e   : > { %s1944_s23 = sld [smem:[#allocation15_spill]]  ;;  %s1948_s17 = smov %s1561_s13 }
 0x16f   : > { %s1945_s24 = sld [smem:[#allocation16_spill]]  ;;  %s1949_s18 = smov %s1398_s19 }
 0x170   : > { %s1950_s19 = smov %s1940_s9  ;;  %21 = sbr.rel (!%p19_p12) target bundleno = 12 (0xc), region = 104 }
 0x175   :  { %811 = vsyncpa [#allocation3], 1 }
 0x176   :  { %813 = vsyncpa [#allocation3 + $0x1], 1 }
 0x177   :  { %814 = vsyncpa [#allocation4], 1 }
 0x178   :  { %816 = vsyncpa [#allocation4 + $0x1], 1 }
 0x179   :  { %817 = vsyncpa [#allocation7], 1 }
 0x17a   :  { %819 = vsyncpa [#allocation7 + $0x1], 1 }

</bundles_post_ra>
